<compile_context>
chip_gen: v6e
topology: v6e:2x2x1
jax: 0.10.0
libtpu: 0.0.40
codegen_flags: <defaults>
</compile_context>

<pallas_src>
import functools

import jax
import jax.numpy as jnp
import numpy as np
from jax import lax
from jax.experimental import pallas as pl
from jax.experimental.pallas import tpu as pltpu


def _conv_matmul_kernel(w_ref, a_ref, b_ref, o_ref, *, negative_slope):
    # w_ref: (OC, K)       reshaped conv weight (compute dtype, e.g. bf16)
    # a_ref: (K, tile_m)   im2col patch tile, transposed (K rows, M cols)
    # b_ref: (OC, 1)       bias, f32
    # o_ref: (OC, tile_m)  lane-dense output tile (last dim multiple of 128)
    y = jnp.dot(w_ref[...], a_ref[...], preferred_element_type=jnp.float32)
    y = y + b_ref[...]                              # broadcast over lanes
    y = jnp.where(y > 0, y, negative_slope * y)     # LeakyReLU in f32 (VPU)
    o_ref[...] = y.astype(o_ref.dtype)


def _round_up(v, mult):
    return ((v + mult - 1) // mult) * mult


def _vmem_footprint_bytes(tile_m, k, oc, in_itemsize):
    # Double-buffered streaming patch tile + double-buffered f32 output tile
    # + resident weight / bias blocks.
    return (2 * k * tile_m * in_itemsize
            + 2 * oc * tile_m * 4
            + 2 * oc * k * in_itemsize
            + 2 * oc * 4)


def _choose_tile_m(m, k, oc, in_itemsize, tile_m_max=2048, vmem_budget=24 << 20):
    """Pick the output-pixel tile size (multiple of 128).

    Big tiles amortize per-grid-step overhead; the tile is capped by a VMEM
    budget (safe for v7x's 64 MiB) and, when M allows it, kept small enough
    that the grid has >= 2 parallel steps so both v7x TensorCores get work.
    """
    m128 = _round_up(m, 128)
    tile_m = min(_round_up(tile_m_max, 128), m128)
    while tile_m > 128 and _vmem_footprint_bytes(tile_m, k, oc, in_itemsize) > vmem_budget:
        tile_m = max(128, (tile_m // 2) // 128 * 128)
    if pl.cdiv(m, tile_m) < 2 and m128 >= 256:
        tile_m = _round_up(m128 // 2, 128)
    return tile_m


def _im2col_t(x, kernel_size, stride, padding, out_dtype):
    """x: (N, C, H, W) -> transposed patches (C*KH*KW, N*OH*OW), plus (OH, OW)."""
    n, c, h, w = x.shape
    kh = kw = kernel_size
    s, p = stride, padding
    oh = (h + 2 * p - kh) // s + 1
    ow = (w + 2 * p - kw) // s + 1
    xp = jnp.pad(x, ((0, 0), (0, 0), (p, p), (p, p))).astype(out_dtype)
    slabs = []
    for i in range(kh):
        for j in range(kw):
            # (N, C, OH, OW) for this kernel offset
            slabs.append(
                xp[:, :, i: i + s * (oh - 1) + 1: s, j: j + s * (ow - 1) + 1: s])
    # (N, C, KH*KW, OH, OW); K-ordering (c, kh, kw) matches weight.reshape(OC, C*KH*KW)
    pt = jnp.stack(slabs, axis=2)
    # -> (C, KH*KW, N, OH, OW) -> (K, M) with M index = n*OH*OW + oh*OW + ow
    pt = jnp.transpose(pt, (1, 2, 0, 3, 4)).reshape(c * kh * kw, n * oh * ow)
    return pt, oh, ow


def conv_block_forward(x, weight, bias, *, stride, padding, negative_slope=0.1,
                       compute_dtype=jnp.bfloat16, tile_m_max=2048):
    """ConvBlock forward: LeakyReLU(Conv2d(x)).  x is NCHW float32."""
    n, c, h, w = x.shape
    oc, c_w, kh, kw = weight.shape
    assert c == c_w and kh == kw

    in_itemsize = jnp.dtype(compute_dtype).itemsize
    patches_t, oh, ow = _im2col_t(x, kh, stride, padding, compute_dtype)  # (K, M)
    k, m = patches_t.shape

    tile_m = _choose_tile_m(m, k, oc, in_itemsize, tile_m_max=tile_m_max)
    grid_m = pl.cdiv(m, tile_m)

    w_mat = weight.reshape(oc, k).astype(compute_dtype)    # (OC, K)
    b_mat = bias.reshape(oc, 1).astype(jnp.float32)        # (OC, 1)

    vmem_limit = int(min(
        max(4 * _vmem_footprint_bytes(tile_m, k, oc, in_itemsize), 8 << 20),
        48 << 20))

    kernel = functools.partial(_conv_matmul_kernel, negative_slope=negative_slope)

    out = pl.pallas_call(
        kernel,
        out_shape=jax.ShapeDtypeStruct((oc, m), jnp.float32),
        grid_spec=pltpu.PrefetchScalarGridSpec(
            num_scalar_prefetch=0,
            grid=(grid_m,),
            in_specs=[
                pl.BlockSpec((oc, k), lambda i: (0, 0)),       # weight, resident
                pl.BlockSpec((k, tile_m), lambda i: (0, i)),   # streamed patch tile
                pl.BlockSpec((oc, 1), lambda i: (0, 0)),       # bias, resident
            ],
            out_specs=pl.BlockSpec((oc, tile_m), lambda i: (0, i)),
        ),
        compiler_params=pltpu.CompilerParams(
            dimension_semantics=("parallel",),
            vmem_limit_bytes=vmem_limit),
    )(w_mat, patches_t, b_mat)

    # (OC, N*OH*OW) -> (N, OC, OH, OW)
    out = out.reshape(oc, n, oh, ow)
    out = jnp.transpose(out, (1, 0, 2, 3))
    return out.astype(x.dtype)


def _reference_conv_block(x, weight, bias, *, stride, padding, negative_slope=0.1):
    y = lax.conv_general_dilated(
        x, weight,
        window_strides=(stride, stride),
        padding=[(padding, padding), (padding, padding)],
        dimension_numbers=("NCHW", "OIHW", "NCHW"),
    )
    y = y + bias.reshape(1, -1, 1, 1)
    return jnp.where(y > 0, y, negative_slope * y)


if __name__ == "__main__":
    # ConvBlock(in_channels=4, out_channels=8, kernel_size=3, stride=1, padding=1)
    in_channels, out_channels = 4, 8
    kernel_size, stride, padding = 3, 1, 1
    batch, spatial = 2, 16

    key = jax.random.PRNGKey(0)
    kx, kw_key, kb = jax.random.split(key, 3)

    x = jax.random.normal(kx, (batch, in_channels, spatial, spatial), jnp.float32)

    # Deterministic parameter init (Kaiming-uniform-like bounds, as in PyTorch Conv2d).
    fan_in = in_channels * kernel_size * kernel_size
    bound = 1.0 / np.sqrt(fan_in)
    weight = jax.random.uniform(
        kw_key, (out_channels, in_channels, kernel_size, kernel_size),
        jnp.float32, minval=-bound, maxval=bound)
    bias = jax.random.uniform(
        kb, (out_channels,), jnp.float32, minval=-bound, maxval=bound)

    # Quantize x / weight to bf16-representable values so the kernel's bf16 MXU
    # path and the f32 reference see identical operands (bf16 x bf16 products
    # are exact in f32; both sides accumulate in f32), keeping tolerance tight.
    x = x.astype(jnp.bfloat16).astype(jnp.float32)
    weight = weight.astype(jnp.bfloat16).astype(jnp.float32)

    fwd = jax.jit(functools.partial(conv_block_forward, stride=stride, padding=padding))
    out = jax.block_until_ready(fwd(x, weight, bias))

    ref = _reference_conv_block(x, weight, bias, stride=stride, padding=padding)
    np.testing.assert_allclose(np.asarray(out), np.asarray(ref), atol=1e-4, rtol=1e-4)

    print("KERNEL_OK")
</pallas_src>

<mosaic_0001>
module attributes {stable_mosaic.version = 11 : i64} {
  func.func @_conv_matmul_kernel(%arg0: i32, %arg1: memref<8x36xbf16, #tpu.memory_space<vmem>>, %arg2: memref<36x256xbf16, #tpu.memory_space<vmem>>, %arg3: memref<8x1xf32, #tpu.memory_space<vmem>>, %arg4: memref<8x256xf32, #tpu.memory_space<vmem>>) attributes {dimension_semantics = [#tpu.dimension_semantics<parallel>], iteration_bounds = array<i64: 2>, scalar_prefetch = 0 : i64, scratch_operands = 0 : i64, tpu.core_type = #tpu.core_type<tc>, window_params = [{pipeline_mode = #tpu.pipeline_mode<synchronous>, transform_indices = @transform_0, window_bounds = array<i64: 8, 36>}, {transform_indices = @transform_1, window_bounds = array<i64: 36, 256>}, {pipeline_mode = #tpu.pipeline_mode<synchronous>, transform_indices = @transform_2, window_bounds = array<i64: 8, 1>}, {transform_indices = @transform_3, window_bounds = array<i64: 8, 256>}]} {
    %c0 = arith.constant 0 : index
    %c0_0 = arith.constant 0 : index
    %0 = vector.load %arg1[%c0, %c0_0] : memref<8x36xbf16, #tpu.memory_space<vmem>>, vector<8x36xbf16>
    %c0_1 = arith.constant 0 : index
    %c0_2 = arith.constant 0 : index
    %1 = vector.load %arg2[%c0_1, %c0_2] : memref<36x256xbf16, #tpu.memory_space<vmem>>, vector<36x256xbf16>
    %cst = arith.constant dense<0.000000e+00> : vector<8x256xf32>
    %2 = tpu.matmul %0, %1, %cst {dimension_numbers = #tpu.dot_dimension_numbers<[1], [0], [0], [1], [0, 0, 1, 1], [], []>} : vector<8x36xbf16>, vector<36x256xbf16>, vector<8x256xf32> -> vector<8x256xf32>
    %c0_3 = arith.constant 0 : index
    %c0_4 = arith.constant 0 : index
    %3 = vector.load %arg3[%c0_3, %c0_4] : memref<8x1xf32, #tpu.memory_space<vmem>>, vector<8x1xf32>
    %4 = vector.broadcast %3 : vector<8x1xf32> to vector<8x256xf32>
    %5 = arith.addf %2, %4 : vector<8x256xf32>
    %cst_5 = arith.constant 0.000000e+00 : f32
    %6 = vector.broadcast %cst_5 : f32 to vector<8x256xf32>
    %7 = arith.cmpf ogt, %5, %6 : vector<8x256xf32>
    %cst_6 = arith.constant 1.000000e-01 : f32
    %8 = vector.broadcast %cst_6 : f32 to vector<8x256xf32>
    %9 = arith.mulf %8, %5 : vector<8x256xf32>
    %10 = arith.select %7, %5, %9 : vector<8x256xi1>, vector<8x256xf32>
    %c0_7 = arith.constant 0 : index
    %c0_8 = arith.constant 0 : index
    %11 = vector.load %arg4[%c0_7, %c0_8] : memref<8x256xf32, #tpu.memory_space<vmem>>, vector<8x256xf32>
    tpu.vector_store %arg4[%c0_7, %c0_8], %10 {strides = array<i32>} : memref<8x256xf32, #tpu.memory_space<vmem>>, vector<8x256xf32>,
    return
  }
  func.func @transform_0(%arg0: i32) -> (i32, i32) {
    %c0_i32 = arith.constant 0 : i32
    %c0_i32_0 = arith.constant 0 : i32
    %c0_i32_1 = arith.constant 0 : i32
    return %c0_i32, %c0_i32_0 : i32, i32
  }
  func.func @transform_1(%arg0: i32) -> (i32, i32) {
    %c0_i32 = arith.constant 0 : i32
    %c0_i32_0 = arith.constant 0 : i32
    return %c0_i32, %arg0 : i32, i32
  }
  func.func @transform_2(%arg0: i32) -> (i32, i32) {
    %c0_i32 = arith.constant 0 : i32
    %c0_i32_0 = arith.constant 0 : i32
    %c0_i32_1 = arith.constant 0 : i32
    return %c0_i32, %c0_i32_0 : i32, i32
  }
  func.func @transform_3(%arg0: i32) -> (i32, i32) {
    %c0_i32 = arith.constant 0 : i32
    %c0_i32_0 = arith.constant 0 : i32
    return %c0_i32, %arg0 : i32, i32
  }
}

</mosaic_0001>

<bundles_post_ra>
// kernel: conv_block_forward.1
= control target key start
LH: loop header
LB: loop body
LE: loop exit
PB: predicated region body
PF: predicated region fallthrough
CT: control target
= control target key end

     0   :  { %s486_s12 = smov 0   ;;  %s488_s13 = smov 0   ;;  %s544_s0 = inlined_call_operand.vmem [shape: bf16[8,36], index: 0, kind: input, shape index: {}]   ;;  %s545_s1 = inlined_call_operand.vmem [shape: bf16[36,512], index: 1, kind: input, shape index: {}]   ;;  %s546_s2 = inlined_call_operand.vmem [shape: f32[8,1], index: 2, kind: input, shape index: {}]   ;;  %s547_s3 = inlined_call_operand.vmem [shape: f32[8,512], index: 3, kind: output, shape index: {}]  }
   0x1   :  { %s490_s14 = smov 0  }
   0x2 LB: > { %s385_s15 = sadd.s32 4294967295, %s463_s14   ;;  %s503_s16 = sadd.s32 1, %s463_s14   ;;  %s463_s14 = sphi %s490_s14, %s550_s14   ;;  %s459_s13 = sphi %s488_s13, %s549_s13   ;;  %s455_s12 = sphi %s486_s12, %s548_s12  }
   0x3   : > { %s38_s17 = ssub.s32 %s463_s14, %s503_s16  ;;  %s41_s18 = sadd.s32 1, %s459_s13 }
   0x4   : > { %p39_p0 = scmp.eq.s32.totalorder %s38_s17, 0  ;;  %p48_p1 = scmp.ne.s32.totalorder %s459_s13, %s455_s12 }
   0x5   : > { %p49_p2 = scmp.eq.s32.totalorder %s463_s14, 0  ;;  %p388_p4 = scmp.ge.s32.totalorder %s463_s14, 2 }
   0x6   : > { %s512_s19 = scalar_select %p39_p0, %s459_s13, %s41_s18  }
   0x7   : > { %p50_p3 = por %p49_p2, %p48_p1  ;;  %127 = sbr.rel (%p388_p4) target bundleno = 19 (0x13), region = 24 }
   0xc   : > { %130 = sbr.rel (!%p50_p3) target bundleno = 19 (0x13), region = 28  ;;  %s132_s20 = sand.u32 (%p50_p3), 1, %s459_s13  }
   0xd   : > { %s404_s21 = sshll.u32 (%p50_p3), %s463_s14, 3  ;;  %s405_s22 = smul.u32 (%p50_p3), 40, %s132_s20 }
   0xe   : > { %s137_s25 = scalar_lea.vmem (%p50_p3), %s545_s1, %s404_s21 }
   0xf   : > { %v174_v0 = vld [vmem:[%s137_s25] sm:$0xff] (%p50_p3)  ;;  %v176_v1 = vld [vmem:[%s137_s25 + $0x10] sm:$0xff] (%p50_p3)  ;;  %s134_s26 = scalar_lea.vmem (%p50_p3), [#allocation2], %s405_s22 }
  0x10   : > { %v178_v2 = vld [vmem:[%s137_s25 + $0x20] sm:$0xff] (%p50_p3)  ;;  %v180_v3 = vld [vmem:[%s137_s25 + $0x30] sm:$0xff] (%p50_p3)  ;;  %175 = vst [vmem:[%s134_s26] sm:$0xff] (%p50_p3), %v174_v0  ;;  %177 = vst [vmem:[%s134_s26 + $0x8] sm:$0xff] (%p50_p3), %v176_v1 }
  0x11   : > { %v182_v4 = vld [vmem:[%s137_s25 + $0x40] sm:$0xff]  ;;  %179 = vst [vmem:[%s134_s26 + $0x10] sm:$0xff] %v178_v2  ;;  %181 = vst [vmem:[%s134_s26 + $0x18] sm:$0xff] %v180_v3 }
  0x12   : > { %183 = vst [vmem:[%s134_s26 + $0x20] sm:$0xff] %v182_v4 }
  0x13 PF: > { %p391_p5 = scmp.ge.s32.totalorder %s463_s14, 1  ;;  %p188_p6 = scmp.lt.s32.totalorder %s463_s14, 3 }
  0x15   : > { %p189_p7 = pnand %p391_p5, %p188_p6 }
  0x16   : > { %s195_s27 = sand.u32 (!%p189_p7), 1, %s455_s12   ;;  %s392_s7 = sshll.u32 (!%p189_p7), %s385_s15, 1 }
  0x17   : > { %192 = sbr.rel (%p189_p7) target bundleno = 245 (0xf5), region = 66  ;;  %p220_p8 = scmp.lt.s32.totalorder (!%p189_p7), %s392_s7, 3 }
  0x18   : > { %s406_s28 = smul.u32 (!%p189_p7), 40, %s195_s27 }
  0x1a   : > { %s197_s4 = scalar_lea.vmem (!%p189_p7), [#allocation2], %s406_s28 }
  0x1c   : > { %v465_v5 = vmov 0   ;;  %v232_v6 = vld [vmem:[%s546_s2] sm:$0xff]  ;;  %vm267_vm0 = vcmask 1041408   ;;  %vm263_vm1 = vcmask 293888   ;;  %s552_s7 = smov (!%p220_p8, %s392_s7), 3 }
  0x1d   : > { %306 = vmatprep.mubr.bf16.mxu0 %v465_v5  ;;  %432 = vset.pattern.permute.xlu0 %v465_v5  ;;  %v231_v7 = vld [vmem:[%s197_s4 + $0x20] sm:$0x33]  ;;  %v435_v10 = vld [vmem:[%s197_s4 + $0x14] ss:$8 sps:$4 sm:$0xff]   ;;  %v437_v12 = vld [vmem:[%s197_s4 + $0x10] ss:$8 sps:$4 sm:$0xff]  }
  0x1e   : > { %235 = vperm.xlu0 %432, %v232_v6   ;;  %v399_v8 = vcombine.high %v231_v7, %v231_v7  ;;  %v398_v9 = vcombine.low %v231_v7, %v231_v7  ;;  %v438_v13 = vld [vmem:[%s197_s4 + $0x4] ss:$8 sps:$4 sm:$0xff]   ;;  %v440_v14 = vld [vmem:[%s197_s4] ss:$8 sps:$4 sm:$0xff]   ;;  %s393_s8 = sshll.u32 %s552_s7, 3 }
  0x1f   : > { %v226_v15 = vld [vmem:[%s544_s0] sm:$0xf]  ;;  %s223_s11 = scalar_lea.vmem %s547_s3, %s393_s8 }
  0x20   : > { %400 = vmatprep.subr.msk.bf16.mxu0 %vm267_vm0, %v399_v8  ;;  %v269_v11 = vsel %vm267_vm0, %v398_v9, 0 }
  0x21   : > { %285 = vmatpush1.bf16.msra.mxu0 %v269_v11 }
  0x22   : > { %286 = vmatprep.subr.bf16.mxu0 %v435_v10 }
  0x25   : > { %287 = vmatpush1.bf16.msra.mxu0 %v437_v12 }
  0x26   : > { %288 = vmatprep.subr.bf16.mxu0 %v438_v13 }
  0x29   : > { %289 = vmatpush1.bf16.msra.mxu0 %v440_v14 }
  0x2c   : > { %401 = vmatmul.mubr.msk.bf16.vlgmr.msra.gmra.mxu0 %vm263_vm1, %v226_v15 }
  0x99   : > { %v236_v16 = vpop.permute.xlu0 %235 }
  0xec   : > { %v308_v17 = vpop.f32.mrf.mxu0 }
  0xed   : > { %v309_v18 = vadd.f32 %v308_v17, %v236_v16 }
  0xee   : > { %v310_v19 = vpop.f32.mrf.mxu0 }
  0xef   : > { %vm315_vm2 = vcmp.gt.f32.partialorder %v309_v18, 0.0  ;;  %v317_v20 = vmul.f32 0.1, %v309_v18  ;;  %v311_v21 = vadd.f32 %v310_v19, %v236_v16 }
  0xf0   : > { %v312_v22 = vpop.f32.mrf.mxu0 }
  0xf1   : > { %v319_v23 = vsel %vm315_vm2, %v309_v18, %v317_v20  ;;  %vm316_vm3 = vcmp.gt.f32.partialorder %v311_v21, 0.0  ;;  %v318_v24 = vmul.f32 0.1, %v311_v21 }
  0xf2   : > { %321 = vst [vmem:[%s223_s11] sm:$0xff] %v319_v23  ;;  %v313_v25 = vpop.f32.mrf.mxu0 }
  0xf3   : > { %v320_v26 = vsel %vm316_vm3, %v311_v21, %v318_v24 }
  0xf4   : > { %322 = vst [vmem:[%s223_s11 + $0x8] sm:$0xff] %v320_v26 }
  0xf5 PF: > { %p10_p9 = scmp.ge.s32.totalorder %s503_s16, 4   ;;  %s548_s12 = smov %s459_s13 }
  0xf6   : > { %s549_s13 = smov %s512_s19  ;;  %s550_s14 = smov %s503_s16 }
  0xf7   :  { %12 = sbr.rel (!%p10_p9) target bundleno = 2 (0x2), region = 105 }

</bundles_post_ra>
